<compile_context>
chip_gen: v7x
topology: tpu7x:2x2x1
jax: 0.10.0
libtpu: 0.0.40
codegen_flags: <defaults>
</compile_context>

<pallas_src>
import functools
import math

import jax
import jax.numpy as jnp
from jax.experimental import pallas as pl
from jax.experimental.pallas import tpu as pltpu


# -----------------------------------------------------------------------------
# pe table construction (matches the PyTorch buffer exactly, computed once).
# -----------------------------------------------------------------------------
def make_positional_encoding(max_len, d_model, dtype=jnp.float32):
    assert d_model % 2 == 0, "d_model must be even (as in the PyTorch module)"
    position = jnp.arange(max_len, dtype=jnp.float32)[:, None]             # (L, 1)
    div_term = jnp.exp(
        jnp.arange(0, d_model, 2, dtype=jnp.float32) * (-math.log(10000.0) / d_model)
    )                                                                      # (D/2,)
    angles = position * div_term                                           # (L, D/2)
    pe = jnp.zeros((max_len, d_model), jnp.float32)
    pe = pe.at[:, 0::2].set(jnp.sin(angles))
    pe = pe.at[:, 1::2].set(jnp.cos(angles))
    return pe.astype(dtype)


# -----------------------------------------------------------------------------
# Kernels (pure elementwise; HBM-bandwidth bound)
# -----------------------------------------------------------------------------
def _posenc_kernel(x_ref, pe_ref, o_ref):
    # x_ref: (bt, tile_r, lanes), pe_ref: (tile_r, lanes)
    o_ref[...] = (x_ref[...] + pe_ref[...][None, :, :]).astype(o_ref.dtype)


def _posenc_dropout_kernel(x_ref, pe_ref, bits_ref, o_ref, *, threshold, scale):
    # keep iff uniform u32 >= threshold  =>  P(keep) = 1 - p (integer compare only).
    y = x_ref[...] + pe_ref[...][None, :, :]
    keep = bits_ref[...] >= jnp.uint32(threshold)
    o_ref[...] = jnp.where(keep, y * scale, jnp.zeros_like(y)).astype(o_ref.dtype)


# -----------------------------------------------------------------------------
# Tiling helpers
# -----------------------------------------------------------------------------
def _sublane(dtype):
    return {4: 8, 2: 16, 1: 32}.get(jnp.dtype(dtype).itemsize, 8)


def _pick_lane_width(total):
    for lanes in (2048, 1024, 512, 256, 128):
        if total % lanes == 0:
            return lanes
    return None


def _vmem_budget():
    """Returns (per-step VMEM budget bytes, vmem_limit_bytes) — generation aware."""
    try:
        cap = int(pltpu.get_tpu_info().vmem_capacity_bytes)
    except Exception:
        cap = 64 << 20                       # assume the smallest (v7x-like)
    if cap >= (100 << 20):                   # v5e / v6e: 128 MiB VMEM per TC
        return 28 << 20, 96 << 20
    return 14 << 20, 48 << 20                # v7x: 64 MiB VMEM per TC


def _choose_tiles(batch, rows, lanes, x_item, pe_item, extra_in_item, sublane,
                  budget_bytes):
    """Pick (bt, tile_r) so the double-buffered x/out(/bits) + pe tiles fit budget."""
    per_row_x = lanes * (4 * x_item + 2 * extra_in_item)   # x in + out (+ bits), 2x-buffered
    per_row_pe = lanes * 2 * pe_item                        # pe, 2x-buffered
    tile_r = max(1, budget_bytes // (per_row_x + per_row_pe))
    if tile_r >= rows:
        tile_r = rows
        bt = (budget_bytes - rows * per_row_pe) // max(rows * per_row_x, 1)
        bt = int(max(1, min(batch, bt)))                    # fold batch into the block
    else:
        bt = 1
        tile_r = int(max(sublane, (tile_r // sublane) * sublane))
        tile_r = min(tile_r, rows)
    return bt, int(tile_r)


# -----------------------------------------------------------------------------
# Wrapper
# -----------------------------------------------------------------------------
def positional_encoding(x, pe, *, p=0.0, training=False, rng_key=None):
    """x: (batch, seq, d_model); pe: (max_len, d_model). Returns dropout(x + pe[:seq])."""
    batch, seq, d_model = x.shape
    if pe.ndim == 3:            # allow a torch-style (1, max_len, d_model) buffer
        pe = pe[0]
    assert pe.shape[-1] == d_model and pe.shape[0] >= seq

    pe_cast = pe if pe.dtype == x.dtype else pe.astype(x.dtype)   # halves pe traffic (bf16)

    use_dropout = bool(training) and p > 0.0
    extra_item = 4 if use_dropout else 0      # uint32 random-bits input in training mode

    # ---- layout: keep the output lane axis a (large) multiple of 128 ----
    if d_model % 128 == 0:
        rows, lanes = seq, d_model
        x_view = x
        pe_view = pe_cast                     # address the full table; no slice copy
        pe_is_full_table = True
    else:
        lanes = _pick_lane_width(seq * d_model)
        if lanes is not None:
            rows = (seq * d_model) // lanes
            x_view = x.reshape(batch, rows, lanes)            # free row-major reshape
            pe_view = pe_cast[:seq].reshape(rows, lanes)
            pe_is_full_table = False
        else:
            # seq*d_model not a multiple of 128: fall back (masked stores, still correct)
            rows, lanes = seq, d_model
            x_view = x
            pe_view = pe_cast[:seq]
            pe_is_full_table = False

    item = jnp.dtype(x.dtype).itemsize
    sub = _sublane(x.dtype)
    budget, vmem_limit = _vmem_budget()
    bt, tile_r = _choose_tiles(batch, rows, lanes, item, item, extra_item, sub, budget)

    # Non-sublane-aligned tiles must be full-extent blocks; slice pe so its row
    # extent matches the tile in that (rare, short-sequence) case.
    if pe_is_full_table and (tile_r % sub != 0) and pe_view.shape[0] != rows:
        pe_view = pe_view[:rows]

    x_spec = pl.BlockSpec((bt, tile_r, lanes), lambda si, bi: (bi, si, 0))
    pe_spec = pl.BlockSpec((tile_r, lanes), lambda si, bi: (si, 0))
    out_spec = pl.BlockSpec((bt, tile_r, lanes), lambda si, bi: (bi, si, 0))
    grid = (pl.cdiv(rows, tile_r), pl.cdiv(batch, bt))   # batch innermost: pe not re-DMA'd

    compiler_params = pltpu.CompilerParams(
        dimension_semantics=("parallel", "parallel"),
        vmem_limit_bytes=vmem_limit,
    )
    out_shape = jax.ShapeDtypeStruct((batch, rows, lanes), x.dtype)

    if use_dropout:
        assert p < 1.0, "dropout p must be < 1"
        if rng_key is None:
            rng_key = jax.random.PRNGKey(0)
        # TODO(synk): RNG stream differs bit-for-bit from torch.nn.Dropout (different PRNG).
        bits = jax.random.bits(rng_key, (batch, rows, lanes), dtype=jnp.uint32)
        threshold = min(int(round(p * (1 << 32))), (1 << 32) - 1)
        bits_spec = pl.BlockSpec((bt, tile_r, lanes), lambda si, bi: (bi, si, 0))
        kernel = functools.partial(_posenc_dropout_kernel,
                                   threshold=threshold, scale=1.0 / (1.0 - float(p)))
        out = pl.pallas_call(
            kernel,
            out_shape=out_shape,
            grid=grid,
            in_specs=[x_spec, pe_spec, bits_spec],
            out_specs=out_spec,
            compiler_params=compiler_params,
        )(x_view, pe_view, bits)
    else:
        out = pl.pallas_call(
            _posenc_kernel,
            out_shape=out_shape,
            grid=grid,
            in_specs=[x_spec, pe_spec],
            out_specs=out_spec,
            compiler_params=compiler_params,
        )(x_view, pe_view)

    return out.reshape(batch, seq, d_model)


# -----------------------------------------------------------------------------
# Pure-JAX reference (eval mode: dropout is the identity).
# -----------------------------------------------------------------------------
def positional_encoding_ref(x, pe):
    seq = x.shape[1]
    return x + pe[:seq].astype(x.dtype)[None, :, :]


if __name__ == "__main__":
    key = jax.random.PRNGKey(0)
    max_len = 5000
    dropout_p = 0.1

    # ---- primary shape implied by the module: batch=2, seq=8, d_model=32 ----
    batch, seq, d_model = 2, 8, 32
    x = jax.random.normal(key, (batch, seq, d_model), dtype=jnp.float32)
    pe = make_positional_encoding(max_len, d_model)

    # eval mode (dropout = identity): must match the reference
    out = jax.block_until_ready(positional_encoding(x, pe, p=dropout_p, training=False))
    ref = positional_encoding_ref(x, pe)
    assert out.shape == x.shape and out.dtype == x.dtype
    assert jnp.allclose(out, ref, atol=1e-5, rtol=1e-5), "mismatch vs reference"

    # train mode: every output element is 0 or (x+pe)/(1-p)
    p_train = 0.5
    out_tr = jax.block_until_ready(
        positional_encoding(x, pe, p=p_train, training=True,
                            rng_key=jax.random.PRNGKey(42)))
    scaled = ref / (1.0 - p_train)
    ok = jnp.isclose(out_tr, 0.0, atol=1e-6) | jnp.isclose(out_tr, scaled,
                                                           atol=1e-5, rtol=1e-5)
    assert bool(jnp.all(ok)), "dropout output has invalid values"
    nz = int(jnp.sum(out_tr != 0.0))
    assert 0 < nz < out_tr.size, "dropout mask degenerate"

    # lane-aligned d_model path (full pe table addressed directly by the BlockSpec)
    b2, s2, d2 = 2, 16, 128
    x2 = jax.random.normal(jax.random.PRNGKey(1), (b2, s2, d2), dtype=jnp.float32)
    pe2 = make_positional_encoding(max_len, d2)
    out2 = jax.block_until_ready(positional_encoding(x2, pe2, p=dropout_p, training=False))
    assert jnp.allclose(out2, positional_encoding_ref(x2, pe2), atol=1e-5, rtol=1e-5)

    print("KERNEL_OK")
</pallas_src>

<mosaic_0001>
module attributes {stable_mosaic.version = 11 : i64} {
  func.func @_posenc_kernel(%arg0: i32, %arg1: i32, %arg2: memref<2x1x256xf32, #tpu.memory_space<vmem>>, %arg3: memref<1x256xf32, #tpu.memory_space<vmem>>, %arg4: memref<2x1x256xf32, #tpu.memory_space<vmem>>) attributes {dimension_semantics = [#tpu.dimension_semantics<parallel>, #tpu.dimension_semantics<parallel>], iteration_bounds = array<i64: 1, 1>, scalar_prefetch = 0 : i64, scratch_operands = 0 : i64, tpu.core_type = #tpu.core_type<tc>, window_params = [{transform_indices = @transform_0, window_bounds = array<i64: 2, 1, 256>}, {transform_indices = @transform_1, window_bounds = array<i64: 1, 256>}, {transform_indices = @transform_2, window_bounds = array<i64: 2, 1, 256>}]} {
    %c0 = arith.constant 0 : index
    %c0_0 = arith.constant 0 : index
    %c0_1 = arith.constant 0 : index
    %0 = vector.load %arg2[%c0, %c0_0, %c0_1] : memref<2x1x256xf32, #tpu.memory_space<vmem>>, vector<2x1x256xf32>
    %c0_2 = arith.constant 0 : index
    %c0_3 = arith.constant 0 : index
    %1 = vector.load %arg3[%c0_2, %c0_3] : memref<1x256xf32, #tpu.memory_space<vmem>>, vector<1x256xf32>
    %2 = vector.shape_cast %1 : vector<1x256xf32> to vector<1x1x256xf32>
    %3 = vector.broadcast %2 : vector<1x1x256xf32> to vector<2x1x256xf32>
    %4 = arith.addf %0, %3 : vector<2x1x256xf32>
    %c0_4 = arith.constant 0 : index
    %c0_5 = arith.constant 0 : index
    %c0_6 = arith.constant 0 : index
    %5 = vector.load %arg4[%c0_4, %c0_5, %c0_6] : memref<2x1x256xf32, #tpu.memory_space<vmem>>, vector<2x1x256xf32>
    tpu.vector_store %arg4[%c0_4, %c0_5, %c0_6], %4 {strides = array<i32>} : memref<2x1x256xf32, #tpu.memory_space<vmem>>, vector<2x1x256xf32>,
    return
  }
  func.func @transform_0(%arg0: i32, %arg1: i32) -> (i32, i32, i32) {
    %c0_i32 = arith.constant 0 : i32
    %c0_i32_0 = arith.constant 0 : i32
    return %arg1, %arg0, %c0_i32 : i32, i32, i32
  }
  func.func @transform_1(%arg0: i32, %arg1: i32) -> (i32, i32) {
    %c0_i32 = arith.constant 0 : i32
    %c0_i32_0 = arith.constant 0 : i32
    return %arg0, %c0_i32 : i32, i32
  }
  func.func @transform_2(%arg0: i32, %arg1: i32) -> (i32, i32, i32) {
    %c0_i32 = arith.constant 0 : i32
    %c0_i32_0 = arith.constant 0 : i32
    return %arg1, %arg0, %c0_i32 : i32, i32, i32
  }
}

</mosaic_0001>

<bundles_post_ra>
// kernel: tpu_custom_call.1
= control target key start
LH: loop header
LB: loop body
LE: loop exit
PB: predicated region body
PF: predicated region fallthrough
CT: control target
= control target key end

     0   :  { %7 = vsyncpa [#allocation3], 0  ;;  %s158_s0 = inlined_call_operand.hbm [shape: f32[2,1,256], index: 0, kind: input, shape index: {}]   ;;  %s159_s1 = inlined_call_operand.vmem [shape: f32[1,256], index: 1, kind: input, shape index: {}]   ;;  %s160_s2 = inlined_call_operand.hbm [shape: f32[2,1,256], index: 2, kind: output, shape index: {}]  }
   0x1   :  { %8 = vsyncpa [#allocation4], 0  ;;  %s106_s9 = smov [#allocation2]   ;;  %s58_s13 = scalar_lea.hbm %s158_s0, 64 }
   0x2   :  { %s14_s10 = sshll.u32 %s106_s9, 4  ;;  %p59_p0 = scmp.ne.s32.totalorder %s158_s0, %s58_s13  ;;  %s15_s10 = int_to_ptr.vmem [resolvable:$true] %s14_s10 }
   0x3   :  { %p62_p1 = scmp.lt.u32.totalorder %s58_s13, %s158_s0 }
   0x5   :  { %p64_p2 = pnand %p62_p1, %p59_p0 }
   0x7   :  { %67 = shalt.err (!%p64_p2)
}
   0x8   :  { %s68_s18 = scalar_lea.vmem %s15_s10, 64  ;;  %p73_p4 = scmp.lt.s32.totalorder %s15_s10, %s15_s10 }
   0x9   :  { %p69_p3 = scmp.ne.s32.totalorder %s15_s10, %s68_s18  ;;  %p74_p5 = scmp.lt.s32.totalorder %s68_s18, %s68_s18 }
   0xb   :  { %p75_p6 = por %p74_p5, %p73_p4 }
   0xd   :  { %p76_p7 = pnand %p75_p6, %p69_p3 }
   0xf   :  { %79 = shalt.err (!%p76_p7)
}
  0x10   :  { %s107_s19 = smov 32   ;;  %s108_s20 = smov 2  }
  0x11   :  { %20 = dma.hbm_to_vmem [thread:$0]  %s158_s0, 64, %s15_s10, [#allocation3], %s107_s19, %s107_s19, %s108_s20  }
  0x12   :  { %102 = dma.done.wait [#allocation3], 64  }
  0x13   :  { %103 = vsyncadd [#allocation3], 4294967232  ;;  %v31_v0 = vlaneseq  ;;  %s109_s23 = smov [#allocation5]   ;;  %v26_v1 = vld [vmem:[#allocation2] sm:$0x3] }
  0x14   :  { %s42_s24 = sshll.u32 %s109_s23, 4  ;;  %v28_v2 = vld [vmem:[%s159_s1] sm:$0x3]  ;;  %v27_v3 = vld [vmem:[#allocation2 + $0x2] sm:$0x3]  ;;  %s43_s24 = int_to_ptr.vmem [resolvable:$true] %s42_s24 }
  0x15   :  { %vm33_vm0 = vcmp.lt.s32.totalorder %v31_v0, 256  ;;  %v29_v4 = vadd.f32 %v28_v2, %v26_v1  ;;  %v30_v5 = vadd.f32 %v28_v2, %v27_v3  ;;  %s80_s27 = scalar_lea.vmem %s43_s24, 64  ;;  %p85_p9 = scmp.lt.s32.totalorder %s43_s24, %s43_s24 }
  0x16   :  { %p81_p8 = scmp.ne.s32.totalorder %s43_s24, %s80_s27  ;;  %p86_p10 = scmp.lt.s32.totalorder %s80_s27, %s80_s27 }
  0x17   :  { %35 = vst.msk [vmem:[#allocation5] sm:$0x3] %vm33_vm0, %v29_v4  ;;  %36 = vst.msk [vmem:[#allocation5 + $0x2] sm:$0x3] %vm33_vm0, %v30_v5 }
  0x18   :  { %p87_p11 = por %p86_p10, %p85_p9 }
  0x1a   :  { %p88_p12 = pnand %p87_p11, %p81_p8 }
  0x1c   :  { %91 = shalt.err (!%p88_p12)
}
  0x1d   :  { %s92_s29 = scalar_lea.hbm %s160_s2, 64 }
  0x1e   :  { %p93_p13 = scmp.ne.s32.totalorder %s160_s2, %s92_s29  ;;  %p96_p0 = scmp.lt.u32.totalorder %s92_s29, %s160_s2 }
  0x20   :  { %p98_p1 = pnand %p96_p0, %p93_p13 }
  0x22   :  { %101 = shalt.err (!%p98_p1)
}
  0x23   :  { %48 = dma.vmem_to_hbm [thread:$0]  %s43_s24, 64, %s160_s2, [#allocation4], %s107_s19, %s107_s19, %s108_s20  }
  0x24   :  { %104 = dma.done.wait [#allocation4], 64  }
  0x25   :  { %105 = vsyncadd [#allocation4], 4294967232 }
  0x26   :  { %52 = vsyncpa [#allocation3], 1 }
  0x27   :  { %53 = vsyncpa [#allocation4], 1 }

</bundles_post_ra>
